<compile_context>
chip_gen: v7x
topology: tpu7x:2x2x1
jax: 0.10.0
libtpu: 0.0.40
codegen_flags: <defaults>
</compile_context>

<pallas_src>
import jax
import jax.numpy as jnp
from jax.experimental import pallas as pl
from jax.experimental.pallas import tpu as pltpu

_LANES = 128


def _make_mtact_kernel(compute_dtype):
    def kernel(coef_ref, x_ref, o_ref):
        # coef_ref: (3,) float32 in SMEM = [A, B, C]
        a = coef_ref[0].astype(compute_dtype)
        b = coef_ref[1].astype(compute_dtype)
        c = coef_ref[2].astype(compute_dtype)
        x = x_ref[...].astype(compute_dtype)
        # tanh lowers to the EUP transcendental slot; VPU does the mul/add.
        y = (a * x + b) * (jnp.tanh(c * x) + 1.0)
        o_ref[...] = y.astype(o_ref.dtype)

    return kernel


def _device_kind() -> str:
    try:
        return jax.devices()[0].device_kind.lower()
    except Exception:
        return ""


def _default_block_bytes(kind: str) -> int:
    if "v7" in kind or "7x" in kind:
        return 8 << 20   # 2 arrays x 2 bufs x 8 MiB = 32 MiB << 64 MiB physical VMEM
    if "v6" in kind:
        return 4 << 20   # 16 MiB total buffering
    return 2 << 20       # v5e / unknown: 8 MiB total, inside 16 MiB default scoped VMEM


def _sublane_multiple(dtype) -> int:
    # Sub-32-bit dtypes pack along sublanes: f32 -> 8, bf16 -> 16, int8 -> 32.
    return max(8, 32 // jnp.dtype(dtype).itemsize)


def mtact(x: jax.Array, alpha, beta, *, block_bytes: int | None = None,
          donate_input: bool = False) -> jax.Array:
    """Elementwise mTACT: (A*x + B) * (tanh(C*x) + 1)."""
    orig_shape = x.shape
    orig_dtype = x.dtype

    alpha = jnp.asarray(alpha, jnp.float32)
    beta = jnp.asarray(beta, jnp.float32)
    a = 0.5 * alpha * alpha
    b = 0.5 - a
    c = 0.5 * (1.0 + beta * beta)

    flat = x.reshape(-1)
    n = flat.shape[0]

    def _jnp_eval(v):
        vf = v.astype(jnp.float32)
        return ((a * vf + b) * (jnp.tanh(c * vf) + 1.0)).astype(orig_dtype)

    # Kernel runs on the largest 128-aligned prefix; tail (< 128 elems) in jnp.
    bulk = (n // _LANES) * _LANES
    if bulk == 0:
        # Tiny input (e.g. torch.randn(2) from the docstring): plain jnp.
        return _jnp_eval(flat).reshape(orig_shape)

    kind = _device_kind()
    itemsize = jnp.dtype(orig_dtype).itemsize
    sub = _sublane_multiple(orig_dtype)
    if block_bytes is None:
        block_bytes = _default_block_bytes(kind)

    rows = bulk // _LANES
    # Largest sublane-aligned block row count inside the per-chip byte budget.
    br_cap = max(sub, (block_bytes // (_LANES * itemsize)) // sub * sub)
    # >= 2 balanced steps when the data allows: pipeline overlap everywhere,
    # both TensorCores on v7x, no ragged last block for medium inputs.
    steps = pl.cdiv(rows, br_cap)
    if rows >= 2 * sub:
        steps = max(steps, 2)
    steps = max(steps, 1)
    br = pl.cdiv(pl.cdiv(rows, steps), sub) * sub
    grid = (pl.cdiv(rows, br),)

    # bf16 math on bf16-capable VPU/EUP (v6e/v7x); f32 elsewhere (incl. v5e).
    if orig_dtype == jnp.bfloat16 and ("v6" in kind or "v7" in kind or "7x" in kind):
        compute_dtype = jnp.bfloat16
    else:
        compute_dtype = jnp.float32

    coefs = jnp.stack([a, b, c])  # (3,) f32 -> SMEM inside the kernel

    slab = (flat if bulk == n else flat[:bulk]).reshape(rows, _LANES)

    # in + out, double-buffered, plus a little headroom for compiler scratch.
    vmem_limit = max(32 << 20, 4 * br * _LANES * itemsize + (4 << 20))

    bulk_out = pl.pallas_call(
        _make_mtact_kernel(compute_dtype),
        out_shape=jax.ShapeDtypeStruct((rows, _LANES), orig_dtype),
        grid=grid,
        in_specs=[
            pl.BlockSpec(memory_space=pltpu.MemorySpace.SMEM),  # [A, B, C]
            pl.BlockSpec((br, _LANES), lambda i: (i, 0)),       # input slab
        ],
        out_specs=pl.BlockSpec((br, _LANES), lambda i: (i, 0)),
        compiler_params=pltpu.CompilerParams(
            dimension_semantics=("parallel",),
            vmem_limit_bytes=vmem_limit,
        ),
        cost_estimate=pl.CostEstimate(
            flops=5 * bulk,
            transcendentals=bulk,
            bytes_accessed=2 * bulk * itemsize,
        ),
        input_output_aliases=({1: 0} if donate_input else {}),
    )(coefs, slab)

    out_flat = bulk_out.reshape(-1)
    if bulk != n:
        out_flat = jnp.concatenate([out_flat, _jnp_eval(flat[bulk:])])
    return out_flat.reshape(orig_shape)


if __name__ == "__main__":
    key = jax.random.PRNGKey(0)
    k1, k2, k3 = jax.random.split(key, 3)

    # Module contract: input (N, *); deterministic alpha/beta in U(0, 0.5).
    alpha = 0.25
    beta = 0.4
    A = 0.5 * alpha ** 2
    B = 0.5 - A
    C = 0.5 * (1.0 + beta ** 2)

    def ref(v):
        return (A * v + B) * (jnp.tanh(C * v) + 1.0)

    # 128-aligned case: kernel handles everything, zero pad/slice traffic.
    x = jax.random.normal(k1, (2, 4, 16, 16), dtype=jnp.float32)  # 2048 elems
    y = mtact(x, alpha, beta)
    jax.block_until_ready(y)
    assert y.shape == x.shape and y.dtype == x.dtype
    assert jnp.allclose(y, ref(x), atol=1e-5, rtol=1e-5)

    # Non-128-divisible total: aligned bulk through the kernel + jnp tail.
    x2 = jax.random.normal(k2, (3, 50, 7), dtype=jnp.float32)     # 1050 = 1024 + 26
    y2 = mtact(x2, alpha, beta)
    jax.block_until_ready(y2)
    assert y2.shape == x2.shape and y2.dtype == x2.dtype
    assert jnp.allclose(y2, ref(x2), atol=1e-5, rtol=1e-5)

    # Tiny input (< 128 elements): pure-jnp fallback (docstring example).
    x3 = jax.random.normal(k3, (2,), dtype=jnp.float32)
    y3 = mtact(x3, alpha, beta)
    jax.block_until_ready(y3)
    assert y3.shape == x3.shape and y3.dtype == x3.dtype
    assert jnp.allclose(y3, ref(x3), atol=1e-5, rtol=1e-5)

    print("KERNEL_OK")
</pallas_src>

<mosaic_0001>
module attributes {stable_mosaic.version = 11 : i64} {
  func.func @kernel(%arg0: i32, %arg1: memref<3xf32, #tpu.memory_space<smem>>, %arg2: memref<8x128xf32, #tpu.memory_space<vmem>>, %arg3: memref<8x128xf32, #tpu.memory_space<vmem>>) attributes {dimension_semantics = [#tpu.dimension_semantics<parallel>], iteration_bounds = array<i64: 2>, scalar_prefetch = 0 : i64, scratch_operands = 0 : i64, tpu.core_type = #tpu.core_type<tc>, window_params = [{transform_indices = @transform_0, window_bounds = array<i64: 3>}, {transform_indices = @transform_1, window_bounds = array<i64: 8, 128>}, {transform_indices = @transform_2, window_bounds = array<i64: 8, 128>}]} {
    %c0 = arith.constant 0 : index
    %0 = memref.load %arg1[%c0] : memref<3xf32, #tpu.memory_space<smem>>
    %c1 = arith.constant 1 : index
    %1 = memref.load %arg1[%c1] : memref<3xf32, #tpu.memory_space<smem>>
    %c2 = arith.constant 2 : index
    %2 = memref.load %arg1[%c2] : memref<3xf32, #tpu.memory_space<smem>>
    %c0_0 = arith.constant 0 : index
    %c0_1 = arith.constant 0 : index
    %3 = vector.load %arg2[%c0_0, %c0_1] : memref<8x128xf32, #tpu.memory_space<vmem>>, vector<8x128xf32>
    %4 = vector.broadcast %0 : f32 to vector<8x128xf32>
    %5 = arith.mulf %4, %3 : vector<8x128xf32>
    %6 = vector.broadcast %1 : f32 to vector<8x128xf32>
    %7 = arith.addf %5, %6 : vector<8x128xf32>
    %8 = vector.broadcast %2 : f32 to vector<8x128xf32>
    %9 = arith.mulf %8, %3 : vector<8x128xf32>
    %10 = math.tanh %9 : vector<8x128xf32>
    %cst = arith.constant 1.000000e+00 : f32
    %11 = vector.broadcast %cst : f32 to vector<8x128xf32>
    %12 = arith.addf %10, %11 : vector<8x128xf32>
    %13 = arith.mulf %7, %12 : vector<8x128xf32>
    %c0_2 = arith.constant 0 : index
    %c0_3 = arith.constant 0 : index
    %14 = vector.load %arg3[%c0_2, %c0_3] : memref<8x128xf32, #tpu.memory_space<vmem>>, vector<8x128xf32>
    tpu.vector_store %arg3[%c0_2, %c0_3], %13 {strides = array<i32>} : memref<8x128xf32, #tpu.memory_space<vmem>>, vector<8x128xf32>,
    return
  }
  func.func @transform_0(%arg0: i32) -> i32 {
    %c0_i32 = arith.constant 0 : i32
    %c0_i32_0 = arith.constant 0 : i32
    return %c0_i32 : i32
  }
  func.func @transform_1(%arg0: i32) -> (i32, i32) {
    %c0_i32 = arith.constant 0 : i32
    %c0_i32_0 = arith.constant 0 : i32
    return %arg0, %c0_i32 : i32, i32
  }
  func.func @transform_2(%arg0: i32) -> (i32, i32) {
    %c0_i32 = arith.constant 0 : i32
    %c0_i32_0 = arith.constant 0 : i32
    return %arg0, %c0_i32 : i32, i32
  }
}

</mosaic_0001>

<bundles_post_ra>
// kernel: tpu_custom_call.1
= control target key start
LH: loop header
LB: loop body
LE: loop exit
PB: predicated region body
PF: predicated region fallthrough
CT: control target
= control target key end

     0   :  { %7 = vsyncpa [#allocation5], 0  ;;  %s694_s0 = inlined_call_operand.hbm [shape: f32[3], index: 0, kind: input, shape index: {}]   ;;  %s695_s1 = inlined_call_operand.hbm [shape: f32[16,128], index: 1, kind: input, shape index: {}]   ;;  %s696_s2 = inlined_call_operand.hbm [shape: f32[16,128], index: 2, kind: output, shape index: {}]  }
   0x1   :  { %8 = vsyncpa [#allocation3], 0 }
   0x2   :  { %10 = vsyncpa [#allocation3 + $0x1], 0 }
   0x3   :  { %11 = vsyncpa [#allocation4], 0 }
   0x4   :  { %13 = vsyncpa [#allocation4 + $0x1], 0  ;;  %s489_s9 = smov 0   ;;  %s491_s10 = smov 0  }
   0x5   :  { %s493_s11 = smov 0   ;;  %s495_s12 = smov 0  }
   0x6 LB: > { %s510_s13 = sadd.s32 4294967295, %s469_s12   ;;  %s281_s14 = sadd.s32 4294967294, %s469_s12   ;;  %s469_s12 = sphi %s495_s12, %s717_s12   ;;  %s465_s11 = sphi %s493_s11, %s716_s11   ;;  %s461_s10 = sphi %s491_s10, %s715_s10   ;;  %s457_s9 = sphi %s489_s9, %s714_s9  }
   0x7   : > { %p60_p0 = scmp.ne.s32.totalorder %s461_s10, %s457_s9  ;;  %p697_p1 = scmp.eq.s32.totalorder %s510_s13, 0 }
   0x8   : > { %p90_p3 = scmp.eq.s32.totalorder %s281_s14, 1  ;;  %p282_p5 = scmp.ge.s32.totalorder %s469_s12, 1 }
   0x9   : > { %p519_p4 = por %p697_p1, %p60_p0  ;;  %p97_p7 = scmp.lt.s32.totalorder %s469_s12, 3 }
   0xa   : > { %p524_p6 = por %p90_p3, %p60_p0  ;;  %s535_s18 = sadd.s32 1, %s469_s12  }
   0xb   : > { %s700_s15 = scalar_select %p519_p4, 1, 0 }
   0xc   : > { %s701_s16 = scalar_select %p524_p6, 1, 0 }
   0xd   : > { %p529_p8 = pnand %p282_p5, %p97_p7  ;;  %s44_s19 = ssub.s32 %s469_s12, %s535_s18 }
   0xe   : > { %s47_s20 = sadd.s32 1, %s465_s11  ;;  %p548_p12 = scmp.eq.s32.totalorder %s44_s19, 0 }
   0xf   : > { %p305_p10 = pneg %p529_p8  ;;  %p54_p13 = scmp.ne.s32.totalorder %s465_s11, %s461_s10 }
  0x10   : > { %p55_p0 = scmp.eq.s32.totalorder %s469_s12, 0  ;;  %p318_p3 = scmp.lt.s32.totalorder %s469_s12, 2 }
  0x11   : > { %p544_p11 = pnand %p305_p10, %p697_p1  ;;  %s356_s25 = scalar_lea.hbm %s694_s0, 16 }
  0x12   : > { %p357_p5 = scmp.ne.s32.totalorder %s694_s0, %s356_s25  ;;  %p363_p1 = scmp.lt.u32.totalorder %s356_s25, %s694_s0 }
  0x13   : > { %p358_p7 = pneg %p544_p11 }
  0x15   : > { %p359_p10 = pnand %p358_p7, %p357_p5 }
  0x17   : > { %p360_p9 = pneg %p359_p10 }
  0x19   : > { %p365_p2 = pnand %p363_p1, %p360_p9 }
  0x1b   : > { %368 = shalt.err (!%p365_p2)
}
  0x1c   : > { %s471_s30 = smov [#allocation2]   ;;  %p56_p1 = por %p55_p0, %p54_p13 }
  0x1d   : > { %308 = dma.hbm_to_smem (!%p544_p11), %s694_s0, 16, %s471_s30, [#allocation5]  }
  0x1e   : > { %s575_s5 = scalar_select %p548_p12, %s465_s11, %s47_s20  }
  0x1f   : > { %p705_p2 = scmp.eq.s32.totalorder %s510_s13, 1  ;;  %s119_s7 = sand.u32 1, %s465_s11  }
  0x20   : > { %s286_s8 = sshll.u32 %s469_s12, 7  ;;  %s285_s14 = sshll.u32 %s119_s7, 3 }
  0x21   : > { %p587_p9 = por %p705_p2, %p54_p13  ;;  %s596_s23 = scalar_lea.hbm %s695_s1, %s286_s8 }
  0x22   : > { %s123_s20 = scalar_lea.vmem [#allocation6], %s285_s14  ;;  %p600_p11 = pnand %p318_p3, %p56_p1 }
  0x23   : > { %s706_s6 = scalar_select %p587_p9, 1, 0 }
  0x24   : > { %s130_s22 = sshll.u32 %s123_s20, 4  ;;  %s120_s25 = scalar_lea.sflag [#allocation3], %s119_s7  ;;  %s604_s22 = int_to_ptr.vmem [resolvable:$true] %s130_s22 }
  0x25   : > { %s369_s26 = scalar_lea.hbm %s596_s23, 128  ;;  %p371_p13 = pneg %p600_p11 }
  0x26   : > { %p370_p12 = scmp.ne.s32.totalorder %s596_s23, %s369_s26  ;;  %s374_s29 = scalar_lea.hbm %s695_s1, 256 }
  0x27   : > { %p375_p3 = scmp.lt.u32.totalorder %s596_s23, %s695_s1  ;;  %p376_p7 = scmp.lt.u32.totalorder %s374_s29, %s369_s26 }
  0x28   : > { %p372_p0 = pnand %p371_p13, %p370_p12  ;;  %p378_p1 = scmp.lt.u32.totalorder %s369_s26, %s596_s23 }
  0x29   : > { %p377_p10 = por %p376_p7, %p375_p3 }
  0x2a   : > { %p373_p5 = pneg %p372_p0 }
  0x2b   : > { %p379_p2 = por %p378_p1, %p377_p10 }
  0x2d   : > { %p380_p6 = pnand %p379_p2, %p373_p5 }
  0x2f   : > { %383 = shalt.err (!%p380_p6)
}
  0x30   : > { %s384_s4 = scalar_lea.vmem %s604_s22, 128  ;;  %s472_s7 = smov [#allocation6]  }
  0x31   : > { %p385_p12 = scmp.ne.s32.totalorder %s604_s22, %s384_s4  ;;  %s389_s8 = sshll.u32 %s472_s7, 4  ;;  %s390_s8 = int_to_ptr.vmem [resolvable:$false] %s389_s8 }
  0x32   : > { %s391_s14 = scalar_lea.vmem %s390_s8, 256  ;;  %p392_p4 = scmp.lt.s32.totalorder %s604_s22, %s390_s8 }
  0x33   : > { %p387_p0 = pnand %p385_p12, %p371_p13  ;;  %p393_p3 = scmp.lt.s32.totalorder %s391_s14, %s384_s4 }
  0x35   : > { %p388_p9 = pneg %p387_p0  ;;  %p394_p7 = por %p393_p3, %p392_p4 }
  0x37   : > { %p395_p10 = pnand %p394_p7, %p388_p9 }
  0x39   : > { %398 = shalt.err (!%p395_p10)
}
  0x3a   : > { %312 = dma.hbm_to_vmem [thread:$0]  (!%p600_p11), %s596_s23, 128, %s604_s22, %s120_s25  }
  0x3b   : > { %139 = sbr.rel (%p529_p8) target bundleno = 111 (0x6f), region = 28  ;;  %p708_p6 = scmp.eq.s32.totalorder (!%p529_p8), %s510_s13, 0 }
  0x42   : > { %444 = dma.done.wait (%p708_p6), [#allocation5], 16   ;;  %p709_p13 = pmov %p708_p6 }
  0x43   : > { %s638_s19 = sand.u32 1, %s461_s10   ;;  %p710_p4 = scmp.ne.s32.totalorder %s700_s15, 0 }
  0x44   : > { %446 = vsyncadd (%p709_p13), [#allocation5], 4294967280  ;;  %s289_s21 = sshll.u32 %s638_s19, 3  ;;  %s146_s20 = scalar_lea.sflag [#allocation3], %s638_s19 }
  0x45   : > { %s149_s24 = scalar_lea.vmem [#allocation6], %s289_s21 }
  0x46   : > { %448 = dma.done.wait (%p710_p4), %s146_s20, 128  }
  0x47   : > { %450 = vsyncadd (%p710_p4), %s146_s20, 4294967168 }
  0x48   : > { %154 = sfence }
  0x49   : > { %s292_s17 = sld [smem:[#allocation2 + $0x2]]  ;;  %s171_s23 = sld [smem:[#allocation2]]  ;;  %v174_v0 = vld [vmem:[%s149_s24] sm:$0xff] }
  0x4a   : > { %s291_s22 = sld [smem:[#allocation2 + $0x1]]  ;;  %s170_s25 = scalar_lea.vmem [#allocation7], %s289_s21 }
  0x4b   : > { %s199_s26 = sshll.u32 %s170_s25, 4  ;;  %s294_s15 = sshll.u32 %s510_s13, 7  ;;  %s647_s26 = int_to_ptr.vmem [resolvable:$true] %s199_s26 }
  0x4c   : > { %s652_s29 = scalar_lea.hbm %s696_s2, %s294_s15  ;;  %s186_s30 = scalar_lea.sflag [#allocation4], %s638_s19 }
  0x4d   : > { %s399_s3 = scalar_lea.vmem %s647_s26, 128  ;;  %p711_p9 = scmp.ne.s32.totalorder %s706_s6, 0 }
  0x4e   : > { %p400_p8 = scmp.ne.s32.totalorder %s647_s26, %s399_s3  ;;  %s473_s13 = smov [#allocation7]  }
  0x4f   : > { %v179_v1 = vstv %s292_s17  ;;  %v175_v3 = vstv %s171_s23  ;;  %s403_s4 = sshll.u32 %s473_s13, 4  ;;  %s404_s4 = int_to_ptr.vmem [resolvable:$false] %s403_s4 }
  0x50   : > { %v180_v2 = vmul.f32 %v179_v1, %v174_v0  ;;  %v176_v4 = vmul.f32 %v175_v3, %v174_v0  ;;  %v177_v5 = vstv %s291_s22  ;;  %p401_p11 = pnand %p400_p8, %p711_p9  ;;  %s405_s7 = scalar_lea.vmem %s404_s4, 256 }
  0x51   : > { %p406_p1 = scmp.lt.s32.totalorder %s647_s26, %s404_s4  ;;  %p407_p2 = scmp.lt.s32.totalorder %s405_s7, %s399_s3 }
  0x52   : > { %354 = vtanh.f32 %v180_v2  ;;  %v178_v6 = vadd.f32 %v177_v5, %v176_v4  ;;  %p402_p5 = pneg %p401_p11 }
  0x53   : > { %p408_p12 = por %p407_p2, %p406_p1 }
  0x55   : > { %p409_p0 = pnand %p408_p12, %p402_p5 }
  0x5c   : > { %v355_v7 = vpop.eup %354 }
  0x5d   : > { %v182_v8 = vadd.f32 1.0, %v355_v7 }
  0x5f   : > { %v183_v9 = vmul.f32 %v182_v8, %v178_v6 }
  0x61   : > { %184 = vst [vmem:[%s170_s25] sm:$0xff] %v183_v9 }
  0x62   : > { %412 = shalt.err (!%p409_p0)
}
  0x63   : > { %s413_s8 = scalar_lea.hbm %s652_s29, 128  ;;  %s417_s21 = scalar_lea.hbm %s696_s2, 256 }
  0x64   : > { %p414_p3 = scmp.ne.s32.totalorder %s652_s29, %s413_s8  ;;  %p418_p6 = scmp.lt.u32.totalorder %s652_s29, %s696_s2 }
  0x65   : > { %p419_p13 = scmp.lt.u32.totalorder %s417_s21, %s413_s8  ;;  %p421_p8 = scmp.lt.u32.totalorder %s413_s8, %s652_s29 }
  0x66   : > { %p415_p7 = pnand %p414_p3, %p711_p9 }
  0x67   : > { %p420_p4 = por %p419_p13, %p418_p6 }
  0x68   : > { %p416_p10 = pneg %p415_p7 }
  0x69   : > { %p422_p11 = por %p421_p8, %p420_p4 }
  0x6b   : > { %p423_p5 = pnand %p422_p11, %p416_p10 }
  0x6d   : > { %426 = shalt.err (!%p423_p5)
}
  0x6e   : > { %303 = dma.vmem_to_hbm [thread:$0]  (%p711_p9), %s647_s26, 128, %s652_s29, %s186_s30  }
  0x6f PF: > { %s211_s17 = sand.u32 1, %s457_s9   ;;  %p712_p1 = scmp.ne.s32.totalorder %s701_s16, 0 }
  0x70   : > { %p713_p2 = scmp.ge.s32.totalorder %s469_s12, 2  ;;  %s212_s23 = scalar_lea.sflag [#allocation4], %s211_s17 }
  0x72   : > { %p314_p12 = pnand %p713_p2, %p712_p1 }
  0x74   : > { %452 = dma.done.wait (!%p314_p12), %s212_s23, 128  }
  0x75   : > { %454 = vsyncadd (!%p314_p12), %s212_s23, 4294967168  ;;  %p16_p0 = scmp.ge.s32.totalorder %s535_s18, 4   ;;  %s714_s9 = smov %s461_s10 }
  0x76   : > { %s715_s10 = smov %s465_s11  ;;  %s716_s11 = smov %s575_s5 }
  0x77   : > { %s717_s12 = smov %s535_s18  ;;  %18 = sbr.rel (!%p16_p0) target bundleno = 6 (0x6), region = 78 }
  0x7e   :  { %217 = vsyncpa [#allocation3], 1 }
  0x7f   :  { %219 = vsyncpa [#allocation3 + $0x1], 1 }
  0x80   :  { %220 = vsyncpa [#allocation4], 1 }
  0x81   :  { %222 = vsyncpa [#allocation4 + $0x1], 1 }
  0x82   :  { %223 = vsyncpa [#allocation5], 1 }
  0x83   :  { %225 = vsyncpa [#allocation5 + $0x1], 1 }

</bundles_post_ra>
